<compile_context>
chip_gen: v7x
topology: tpu7x:2x2x1
jax: 0.10.0
libtpu: 0.0.40
codegen_flags: <defaults>
</compile_context>

<pallas_src>
import functools
import math

import jax
import jax.numpy as jnp
from jax import lax
from jax.experimental import pallas as pl
from jax.experimental.pallas import tpu as pltpu


def _round_up(x, m):
    return ((x + m - 1) // m) * m


def _pick_tile(dim, target, align):
    """Largest multiple of `align` that divides `dim` and is <= `target`.

    If `dim <= target` the whole dimension is one block (always legal).
    Falls back to the full dimension only for pathological shapes with no
    aligned divisor.
    # TODO(synk): pad+mask instead of the full-dim fallback for prime-ish dims.
    """
    if dim <= target:
        return dim
    t = (target // align) * align
    while t >= align:
        if dim % t == 0:
            return t
        t -= align
    return dim


# ---------------------------------------------------------------------------
# Tiled matmul + bias: y = x @ w + b, accumulating over the K grid axis (P1+P3).
# ---------------------------------------------------------------------------
def _matmul_bias_kernel(x_ref, w_ref, b_ref, o_ref, acc_ref):
    k = pl.program_id(2)

    @pl.when(k == 0)
    def _():
        acc_ref[...] = jnp.zeros_like(acc_ref)

    acc_ref[...] += jnp.dot(
        x_ref[...], w_ref[...], preferred_element_type=jnp.float32
    )

    @pl.when(k == pl.num_programs(2) - 1)
    def _():
        o_ref[...] = (acc_ref[...] + b_ref[...]).astype(o_ref.dtype)


def linear(x2d, w, b, *, out_dtype=None, tm=512, tn=512, tk=512):
    """x2d: [M, K], w: [K, N], b: [N] (kept f32) -> [M, N] in `out_dtype`."""
    M, K = x2d.shape
    K2, N = w.shape
    assert K == K2
    out_dtype = out_dtype or x2d.dtype
    # 512-class bf16 tiles: ~5 MiB double-buffered footprint -> fits the default
    # scoped VMEM on every generation incl. v7x (64 MiB physical). v5e/v6e could
    # go larger, but this keeps one config correct everywhere.
    tm = _pick_tile(M, tm, 8)
    tn = _pick_tile(N, tn, 128)
    tk = _pick_tile(K, tk, 128)
    b2d = b.reshape(1, N).astype(jnp.float32)

    return pl.pallas_call(
        _matmul_bias_kernel,
        out_shape=jax.ShapeDtypeStruct((M, N), out_dtype),
        grid_spec=pltpu.PrefetchScalarGridSpec(
            num_scalar_prefetch=0,
            grid=(M // tm, N // tn, K // tk),
            in_specs=[
                pl.BlockSpec((tm, tk), lambda i, j, k: (i, k)),
                pl.BlockSpec((tk, tn), lambda i, j, k: (k, j)),
                pl.BlockSpec((1, tn), lambda i, j, k: (0, j)),
            ],
            out_specs=pl.BlockSpec((tm, tn), lambda i, j, k: (i, j)),
            scratch_shapes=[pltpu.VMEM((tm, tn), jnp.float32)],
        ),
        compiler_params=pltpu.CompilerParams(
            dimension_semantics=("parallel", "parallel", "arbitrary"),
        ),
    )(x2d, w, b2d)


# ---------------------------------------------------------------------------
# Flash attention over a pre-packed qkv tensor [B, S, H*3*hdp]:
# per head the last axis is [q (hdp) | k (hdp) | v (hdp)], q already scaled.
# grid = (B, H, q_tiles, kv_tiles); kv axis is the "arbitrary" reduction axis.
# ---------------------------------------------------------------------------
def _flash_attn_kernel(q_ref, k_ref, v_ref, o_ref, m_sc, l_sc, acc_sc):
    ki = pl.program_id(3)

    @pl.when(ki == 0)
    def _():
        m_sc[...] = jnp.full_like(m_sc, -jnp.inf)
        l_sc[...] = jnp.zeros_like(l_sc)
        acc_sc[...] = jnp.zeros_like(acc_sc)

    q = q_ref[0]  # (tq, hdp) bf16, pre-scaled by 1/sqrt(head_dim)
    k = k_ref[0]  # (tk, hdp) bf16
    v = v_ref[0]  # (tk, hdp) bf16

    # Contract the shared last dim: no in-kernel k.T (XLU transpose) needed.
    s = lax.dot_general(
        q, k, dimension_numbers=(((1,), (1,)), ((), ())),
        preferred_element_type=jnp.float32,
    )  # (tq, tk) f32

    m_prev = m_sc[0]                                             # (tq, 1) f32
    m_new = jnp.maximum(m_prev, s.max(axis=-1, keepdims=True))
    alpha = jnp.exp(m_prev - m_new)
    p = jnp.exp(s - m_new)                                       # f32 (v5e-safe)

    l_sc[0] = alpha * l_sc[0] + p.sum(axis=-1, keepdims=True)
    acc_sc[0] = alpha * acc_sc[0] + jnp.dot(
        p.astype(v.dtype), v, preferred_element_type=jnp.float32
    )
    m_sc[0] = m_new

    @pl.when(ki == pl.num_programs(3) - 1)
    def _():
        inv_l = pl.reciprocal(l_sc[0], approx=True)   # EUP slot -> ~free
        o_ref[0] = (acc_sc[0] * inv_l).astype(o_ref.dtype)


def flash_attention(qkv, B, S, H, hdp, *, out_dtype, tq=256, tk=512):
    """qkv: [B, S, H*3*hdp] (per-head [q|k|v], lane-dense) -> [B, S, H*hdp]."""
    tq = _pick_tile(S, tq, 8)
    tk = _pick_tile(S, tk, 8)

    return pl.pallas_call(
        _flash_attn_kernel,
        out_shape=jax.ShapeDtypeStruct((B, S, H * hdp), out_dtype),
        grid_spec=pltpu.PrefetchScalarGridSpec(
            num_scalar_prefetch=0,
            grid=(B, H, S // tq, S // tk),
            in_specs=[
                pl.BlockSpec((1, tq, hdp), lambda b, h, qi, ki: (b, qi, h * 3)),
                pl.BlockSpec((1, tk, hdp), lambda b, h, qi, ki: (b, ki, h * 3 + 1)),
                pl.BlockSpec((1, tk, hdp), lambda b, h, qi, ki: (b, ki, h * 3 + 2)),
            ],
            out_specs=pl.BlockSpec((1, tq, hdp), lambda b, h, qi, ki: (b, qi, h)),
            scratch_shapes=[
                pltpu.VMEM((1, tq, 1), jnp.float32),    # running max
                pltpu.VMEM((1, tq, 1), jnp.float32),    # running sum
                pltpu.VMEM((1, tq, hdp), jnp.float32),  # output accumulator
            ],
        ),
        compiler_params=pltpu.CompilerParams(
            dimension_semantics=("parallel", "parallel", "parallel", "arbitrary"),
        ),
    )(qkv, qkv, qkv)


# ---------------------------------------------------------------------------
# MultiheadAttention forward (matches the PyTorch module: reshape->permute->
# chunk head split, softmax(qk^T/sqrt(hd)) v, head merge, o_proj).
# ---------------------------------------------------------------------------
def multihead_attention(x, w_qkv, b_qkv, w_o, b_o, num_heads,
                        *, mxu_dtype=jnp.bfloat16):
    """x: [B, S, Din]; w_qkv: [3E, Din]; b_qkv: [3E]; w_o: [E, E]; b_o: [E]."""
    B, S, Din = x.shape
    three_e = w_qkv.shape[0]
    E = three_e // 3
    H = num_heads
    hd = E // H
    hdp = max(128, _round_up(hd, 128))   # lane-dense (zero-padded) head dim
    pad = hdp - hd
    scale = 1.0 / math.sqrt(hd)

    # --- Weight re-packing (weight-sized ops only, no activation transposes) --
    # Module semantics: qkv feature f -> (head h, type t in {q,k,v}, dim d).
    # Re-pack so the projection emits [B*S, H*3*hdp] directly in the flash
    # layout, with 1/sqrt(hd) folded into the Q rows (zero per-step scaling).
    wq = w_qkv.reshape(H, 3, hd, Din)
    bq = b_qkv.reshape(H, 3, hd)
    type_scale = jnp.array([scale, 1.0, 1.0], dtype=w_qkv.dtype)
    wq = wq * type_scale.reshape(1, 3, 1, 1)
    bq = bq * type_scale.reshape(1, 3, 1)
    wq = jnp.pad(wq, ((0, 0), (0, 0), (0, pad), (0, 0)))        # [H,3,hdp,Din]
    bq = jnp.pad(bq, ((0, 0), (0, 0), (0, pad)))                # [H,3,hdp]
    w_qkv_arr = wq.transpose(3, 0, 1, 2).reshape(Din, H * 3 * hdp)
    b_qkv_arr = bq.reshape(H * 3 * hdp)

    # o_proj weight re-packed for the [B, S, H*hdp] attention-output layout
    # (padded lanes hit zero rows, so the padding is mathematically inert).
    wo = w_o.T.reshape(H, hd, E)
    wo = jnp.pad(wo, ((0, 0), (0, pad), (0, 0)))                # [H,hdp,E]
    w_o_arr = wo.reshape(H * hdp, E)

    # --- bf16 MXU operands; accumulation / softmax math stay f32 in-kernel ---
    x_lp = x.astype(mxu_dtype).reshape(B * S, Din)
    w_qkv_lp = w_qkv_arr.astype(mxu_dtype)
    w_o_lp = w_o_arr.astype(mxu_dtype)

    # QKV projection, emitted directly in the flash-friendly layout.
    qkv = linear(x_lp, w_qkv_lp, b_qkv_arr, out_dtype=mxu_dtype)  # [B*S, H*3*hdp]
    qkv = qkv.reshape(B, S, H * 3 * hdp)                          # free reshape

    # TODO(synk): optional `mask` and `return_attention=True` paths are not
    # implemented (the flash kernel never materializes the attention matrix).
    vals = flash_attention(qkv, B, S, H, hdp, out_dtype=mxu_dtype)  # [B,S,H*hdp]

    # Output projection; final output back in f32 (module dtype).
    out = linear(vals.reshape(B * S, H * hdp), w_o_lp, b_o, out_dtype=x.dtype)
    return out.reshape(B, S, E)


# ---------------------------------------------------------------------------
# Pure-JAX reference (mirrors the PyTorch forward exactly, f32).
# ---------------------------------------------------------------------------
def ref_mha(x, w_qkv, b_qkv, w_o, b_o, num_heads):
    B, S, Din = x.shape
    E = w_o.shape[0]
    hd = E // num_heads
    qkv = x @ w_qkv.T + b_qkv
    qkv = qkv.reshape(B, S, num_heads, 3 * hd).transpose(0, 2, 1, 3)
    q, k, v = jnp.split(qkv, 3, axis=-1)
    logits = jnp.einsum("bhqd,bhkd->bhqk", q, k) / math.sqrt(hd)
    attn = jax.nn.softmax(logits, axis=-1)
    vals = jnp.einsum("bhqk,bhkd->bhqd", attn, v)
    vals = vals.transpose(0, 2, 1, 3).reshape(B, S, E)
    return vals @ w_o.T + b_o


if __name__ == "__main__":
    B, S = 2, 8
    INPUT_DIM = 32
    EMBED_DIM = 32
    NUM_HEADS = 4

    key = jax.random.PRNGKey(0)
    kx, kq, ko = jax.random.split(key, 3)

    x = jax.random.normal(kx, (B, S, INPUT_DIM), dtype=jnp.float32)

    def xavier_uniform(k, shape):  # torch layout: [fan_out, fan_in]
        fan_out, fan_in = shape
        bound = math.sqrt(6.0 / (fan_in + fan_out))
        return jax.random.uniform(k, shape, jnp.float32, -bound, bound)

    w_qkv = xavier_uniform(kq, (3 * EMBED_DIM, INPUT_DIM))
    b_qkv = jnp.zeros((3 * EMBED_DIM,), jnp.float32)
    w_o = xavier_uniform(ko, (EMBED_DIM, EMBED_DIM))
    b_o = jnp.zeros((EMBED_DIM,), jnp.float32)

    out = multihead_attention(x, w_qkv, b_qkv, w_o, b_o, NUM_HEADS)
    out = jax.block_until_ready(out)

    ref = ref_mha(x, w_qkv, b_qkv, w_o, b_o, NUM_HEADS)
    assert out.shape == (B, S, EMBED_DIM)
    max_err = float(jnp.max(jnp.abs(out - ref)))
    assert jnp.allclose(out, ref, atol=2e-2, rtol=2e-2), (
        f"mismatch vs reference (max abs err {max_err})"
    )

    print("KERNEL_OK")
</pallas_src>

<mosaic_0001>
module attributes {stable_mosaic.version = 11 : i64} {
  func.func @_matmul_bias_kernel(%arg0: i32, %arg1: i32, %arg2: i32, %arg3: memref<16x32xbf16, #tpu.memory_space<vmem>>, %arg4: memref<32x512xbf16, #tpu.memory_space<vmem>>, %arg5: memref<1x512xf32, #tpu.memory_space<vmem>>, %arg6: memref<16x512xbf16, #tpu.memory_space<vmem>>, %arg7: memref<16x512xf32, #tpu.memory_space<vmem>>) attributes {dimension_semantics = [#tpu.dimension_semantics<parallel>, #tpu.dimension_semantics<parallel>, #tpu.dimension_semantics<arbitrary>], iteration_bounds = array<i64: 1, 3, 1>, scalar_prefetch = 0 : i64, scratch_operands = 1 : i64, tpu.core_type = #tpu.core_type<tc>, window_params = [{transform_indices = @transform_0, window_bounds = array<i64: 16, 32>}, {transform_indices = @transform_1, window_bounds = array<i64: 32, 512>}, {transform_indices = @transform_2, window_bounds = array<i64: 1, 512>}, {transform_indices = @transform_3, window_bounds = array<i64: 16, 512>}]} {
    %c0_i32 = arith.constant 0 : i32
    %0 = arith.cmpi eq, %arg2, %c0_i32 : i32
    %1 = arith.extui %0 : i1 to i32
    %c0_i32_0 = arith.constant 0 : i32
    %2 = arith.cmpi ne, %1, %c0_i32_0 : i32
    scf.if %2 {
      %cst_10 = arith.constant 0.000000e+00 : f32
      %12 = vector.broadcast %cst_10 : f32 to vector<16x512xf32>
      %c0_11 = arith.constant 0 : index
      %c0_12 = arith.constant 0 : index
      %13 = vector.load %arg7[%c0_11, %c0_12] : memref<16x512xf32, #tpu.memory_space<vmem>>, vector<16x512xf32>
      tpu.vector_store %arg7[%c0_11, %c0_12], %12 {strides = array<i32>} : memref<16x512xf32, #tpu.memory_space<vmem>>, vector<16x512xf32>,
    } else {
    }
    %c0 = arith.constant 0 : index
    %c0_1 = arith.constant 0 : index
    %3 = vector.load %arg7[%c0, %c0_1] : memref<16x512xf32, #tpu.memory_space<vmem>>, vector<16x512xf32>
    %c0_2 = arith.constant 0 : index
    %c0_3 = arith.constant 0 : index
    %4 = vector.load %arg3[%c0_2, %c0_3] : memref<16x32xbf16, #tpu.memory_space<vmem>>, vector<16x32xbf16>
    %c0_4 = arith.constant 0 : index
    %c0_5 = arith.constant 0 : index
    %5 = vector.load %arg4[%c0_4, %c0_5] : memref<32x512xbf16, #tpu.memory_space<vmem>>, vector<32x512xbf16>
    %cst = arith.constant dense<0.000000e+00> : vector<16x512xf32>
    %6 = tpu.matmul %4, %5, %cst {dimension_numbers = #tpu.dot_dimension_numbers<[1], [0], [0], [1], [0, 0, 1, 1], [], []>} : vector<16x32xbf16>, vector<32x512xbf16>, vector<16x512xf32> -> vector<16x512xf32>
    %7 = arith.addf %3, %6 : vector<16x512xf32>
    %c0_6 = arith.constant 0 : index
    %c0_7 = arith.constant 0 : index
    %8 = vector.load %arg7[%c0_6, %c0_7] : memref<16x512xf32, #tpu.memory_space<vmem>>, vector<16x512xf32>
    tpu.vector_store %arg7[%c0_6, %c0_7], %7 {strides = array<i32>} : memref<16x512xf32, #tpu.memory_space<vmem>>, vector<16x512xf32>,
    %c0_i32_8 = arith.constant 0 : i32
    %9 = arith.cmpi eq, %arg2, %c0_i32_8 : i32
    %10 = arith.extui %9 : i1 to i32
    %c0_i32_9 = arith.constant 0 : i32
    %11 = arith.cmpi ne, %10, %c0_i32_9 : i32
    scf.if %11 {
      %c0_10 = arith.constant 0 : index
      %c0_11 = arith.constant 0 : index
      %12 = vector.load %arg7[%c0_10, %c0_11] : memref<16x512xf32, #tpu.memory_space<vmem>>, vector<16x512xf32>
      %c0_12 = arith.constant 0 : index
      %c0_13 = arith.constant 0 : index
      %13 = vector.load %arg5[%c0_12, %c0_13] : memref<1x512xf32, #tpu.memory_space<vmem>>, vector<1x512xf32>
      %14 = vector.broadcast %13 : vector<1x512xf32> to vector<16x512xf32>
      %15 = arith.addf %12, %14 : vector<16x512xf32>
      %16 = arith.truncf %15 : vector<16x512xf32> to vector<16x512xbf16>
      %c0_14 = arith.constant 0 : index
      %c0_15 = arith.constant 0 : index
      %17 = vector.load %arg6[%c0_14, %c0_15] : memref<16x512xbf16, #tpu.memory_space<vmem>>, vector<16x512xbf16>
      tpu.vector_store %arg6[%c0_14, %c0_15], %16 {strides = array<i32>} : memref<16x512xbf16, #tpu.memory_space<vmem>>, vector<16x512xbf16>,
    } else {
    }
    return
  }
  func.func @transform_0(%arg0: i32, %arg1: i32, %arg2: i32) -> (i32, i32) {
    %c0_i32 = arith.constant 0 : i32
    return %arg0, %arg2 : i32, i32
  }
  func.func @transform_1(%arg0: i32, %arg1: i32, %arg2: i32) -> (i32, i32) {
    %c0_i32 = arith.constant 0 : i32
    return %arg2, %arg1 : i32, i32
  }
  func.func @transform_2(%arg0: i32, %arg1: i32, %arg2: i32) -> (i32, i32) {
    %c0_i32 = arith.constant 0 : i32
    %c0_i32_0 = arith.constant 0 : i32
    return %c0_i32, %arg1 : i32, i32
  }
  func.func @transform_3(%arg0: i32, %arg1: i32, %arg2: i32) -> (i32, i32) {
    %c0_i32 = arith.constant 0 : i32
    return %arg0, %arg1 : i32, i32
  }
}

</mosaic_0001>

<bundles_post_ra>
// kernel: tpu_custom_call.1
= control target key start
LH: loop header
LB: loop body
LE: loop exit
PB: predicated region body
PF: predicated region fallthrough
CT: control target
= control target key end

     0   :  { %s1285_s0 = inlined_call_operand.hbm [shape: bf16[16,32], index: 0, kind: input, shape index: {}]   ;;  %s1286_s1 = inlined_call_operand.hbm [shape: bf16[32,1536], index: 1, kind: input, shape index: {}]   ;;  %s1287_s2 = inlined_call_operand.hbm [shape: f32[1,1536], index: 2, kind: input, shape index: {}]   ;;  %s1288_s3 = inlined_call_operand.hbm [shape: bf16[16,1536], index: 3, kind: output, shape index: {}]  }
   0x1   :  { %1297 = sst [smem:[#allocation14_spill]] %s1286_s1 }
   0x2   :  { %8 = vsyncpa [#allocation4], 0 }
   0x3   :  { %9 = vsyncpa [#allocation7], 0 }
   0x4   :  { %11 = vsyncpa [#allocation7 + $0x1], 0 }
   0x5   :  { %12 = vsyncpa [#allocation5], 0 }
   0x6   :  { %14 = vsyncpa [#allocation5 + $0x1], 0  ;;  %s1028_s12 = smov 0   ;;  %s1030_s13 = smov 0  }
   0x7   :  { %s1032_s14 = smov 0   ;;  %s1034_s15 = smov 0  }
   0x8   :  { %s1036_s16 = smov 0   ;;  %s1038_s17 = smov 0  }
   0x9 LB: > { %s35_s18 = sadd.s32 1, %s989_s16  ;;  %s76_s19 = sadd.s32 1, %s981_s14  ;;  %s993_s17 = sphi %s1038_s17, %s20_s17   ;;  %s989_s16 = sphi %s1036_s16, %s1320_s16   ;;  %s985_s15 = sphi %s1034_s15, %s1319_s15   ;;  %s981_s14 = sphi %s1032_s14, %s1318_s14   ;;  %s977_s13 = sphi %s1030_s13, %s1317_s13   ;;  %s973_s12 = sphi %s1028_s12, %s1316_s12  }
   0xa   : > { %p37_p0 = scmp.ge.s32.totalorder %s35_s18, 3  ;;  %p83_p1 = scmp.ne.s32.totalorder %s981_s14, %s977_s13 }
   0xb   : > { %p84_p2 = scmp.eq.s32.totalorder %s993_s17, 0  ;;  %p745_p4 = scmp.lt.s32.totalorder %s993_s17, 3 }
   0xc   : > { %s1322_s18 = smov (%p37_p0, %s35_s18), 0  ;;  %s184_s21 = sand.u32 1, %s993_s17  }
   0xd   : > { %1298 = sst [smem:[#allocation13_spill]] %s1322_s18  ;;  %p85_p3 = por %p84_p2, %p83_p1 }
   0xe   : > { %s72_s20 = ssub.s32 %s989_s16, %s1322_s18  ;;  %s186_s22 = sand.u32 1, %s981_s14  }
   0xf   : > { %p74_p5 = scmp.eq.s32.totalorder %s72_s20, 0  ;;  %s712_s23 = sshll.u32 %s989_s16, 8 }
  0x10   : > { %s681_s25 = sshll.u32 %s186_s22, 6  ;;  %s1299_s1 = sld [smem:[#allocation14_spill]] }
  0x11   : > { %s1075_s24 = scalar_select %p74_p5, %s981_s14, %s76_s19  }
  0x12   : > { %p1084_p6 = pnand %p745_p4, %p85_p3  ;;  %s188_s30 = scalar_lea.vmem [#allocation6], %s681_s25 }
  0x13   : > { %s198_s4 = sshll.u32 %s188_s30, 4  ;;  %s1090_s5 = scalar_lea.sflag [#allocation7], %s184_s21  ;;  %s1088_s4 = int_to_ptr.vmem [resolvable:$true] %s198_s4 }
  0x14   : > { %s1300_s29 = scalar_select %p1084_p6, 1, 0 }
  0x15   : > { %p1291_p8 = pneg %p1084_p6 }
  0x16   : > { %s1082_s28 = scalar_lea.hbm %s1299_s1, %s712_s23  ;;  %s824_s9 = scalar_lea.hbm %s1299_s1, 3072 }
  0x17   : > { %s819_s6 = scalar_lea.hbm %s1082_s28, 1024  ;;  %p825_p11 = scmp.lt.u32.totalorder %s1082_s28, %s1299_s1 }
  0x18   : > { %p820_p7 = scmp.ne.s32.totalorder %s1082_s28, %s819_s6  ;;  %p826_p12 = scmp.lt.u32.totalorder %s824_s9, %s819_s6 }
  0x19   : > { %p828_p0 = scmp.lt.u32.totalorder %s819_s6, %s1082_s28 }
  0x1a   : > { %p822_p9 = pnand %p1291_p8, %p820_p7  ;;  %p827_p13 = por %p826_p12, %p825_p11 }
  0x1c   : > { %p823_p10 = pneg %p822_p9  ;;  %p829_p2 = por %p828_p0, %p827_p13 }
  0x1e   : > { %p830_p3 = pnand %p829_p2, %p823_p10 }
  0x20   : > { %833 = shalt.err (!%p830_p3)
}
  0x21   : > { %s834_s19 = scalar_lea.vmem %s1088_s4, 1024  ;;  %s995_s20 = smov [#allocation6]  }
  0x22   : > { %p835_p4 = scmp.ne.s32.totalorder %s1088_s4, %s834_s19  ;;  %s839_s21 = sshll.u32 %s995_s20, 4  ;;  %s840_s21 = int_to_ptr.vmem [resolvable:$false] %s839_s21 }
  0x23   : > { %s841_s23 = scalar_lea.vmem %s840_s21, 2048  ;;  %p842_p9 = scmp.lt.s32.totalorder %s1088_s4, %s840_s21 }
  0x24   : > { %p837_p5 = pnand %p835_p4, %p1291_p8  ;;  %p843_p11 = scmp.lt.s32.totalorder %s841_s23, %s834_s19 }
  0x26   : > { %p838_p7 = pneg %p837_p5  ;;  %p844_p12 = por %p843_p11, %p842_p9 }
  0x28   : > { %p845_p13 = pnand %p844_p12, %p838_p7 }
  0x2a   : > { %848 = shalt.err (!%p845_p13)
}
  0x2b   : > { %s996_s25 = smov 768   ;;  %s997_s26 = smov 256  }
  0x2c   : > { %s998_s27 = smov 16   ;;  %s1119_s30 = sadd.s32 4294967295, %s993_s17  }
  0x2d   : > { %736 = dma.hbm_to_vmem [thread:$0]  (!%p1084_p6), %s1082_s28, 1024, %s1088_s4, %s1090_s5, %s996_s25, %s997_s26, %s998_s27  }
  0x2e   : > { %s677_s6 = sadd.s32 4294967294, %s993_s17   ;;  %p89_p10 = scmp.ne.s32.totalorder %s977_s13, %s973_s12 }
  0x2f   : > { %p1290_p0 = scmp.eq.s32.totalorder %s1119_s30, 0  ;;  %p141_p2 = scmp.eq.s32.totalorder %s1119_s30, 2 }
  0x30   : > { %p147_p3 = scmp.eq.s32.totalorder %s677_s6, 2  ;;  %p678_p5 = scmp.ge.s32.totalorder %s993_s17, 1 }
  0x31   : > { %p1128_p4 = por %p1290_p0, %p89_p10  ;;  %p1136_p7 = por %p141_p2, %p83_p1 }
  0x32   : > { %p1140_p9 = por %p147_p3, %p89_p10  ;;  %p154_p11 = scmp.lt.s32.totalorder %s993_s17, 4 }
  0x33   : > { %s1301_s7 = scalar_select %p1128_p4, 1, 0 }
  0x34   : > { %s1302_s28 = scalar_select %p1136_p7, 1, 0 }
  0x35   : > { %s1303_s4 = scalar_select %p1140_p9, 1, 0 }
  0x36   : > { %p1145_p12 = pnand %p678_p5, %p154_p11  ;;  %s999_s9 = smov [#allocation3]  }
  0x37   : > { %s170_s10 = sshll.u32 %s999_s9, 4  ;;  %s684_s11 = sshll.u32 %s186_s22, 2  ;;  %s1149_s10 = int_to_ptr.vmem [resolvable:$true] %s170_s10 }
  0x38   : > { %s1304_s8 = scalar_select %p1145_p12, 1, 0 }
  0x39   : > { %p729_p13 = pneg %p1145_p12  ;;  %s713_s19 = sshll.u32 %s989_s16, 6 }
  0x3a   : > { %s1165_s25 = scalar_lea.hbm %s1287_s2, %s713_s19  ;;  %s212_s26 = scalar_lea.vmem [#allocation8], %s684_s11 }
  0x3b   : > { %p1158_p1 = pnand %p729_p13, %p1290_p0  ;;  %s220_s27 = sshll.u32 %s212_s26, 4  ;;  %s1167_s27 = int_to_ptr.vmem [resolvable:$true] %s220_s27 }
  0x3c   : > { %s849_s22 = scalar_lea.hbm %s1285_s0, 128 }
  0x3d   : > { %p850_p10 = scmp.ne.s32.totalorder %s1285_s0, %s849_s22  ;;  %p851_p2 = pneg %p1158_p1 }
  0x3e   : > { %p856_p11 = scmp.lt.u32.totalorder %s849_s22, %s1285_s0 }
  0x3f   : > { %p852_p3 = pnand %p851_p2, %p850_p10 }
  0x41   : > { %p853_p5 = pneg %p852_p3 }
  0x43   : > { %p858_p13 = pnand %p856_p11, %p853_p5 }
  0x45   : > { %861 = shalt.err (!%p858_p13)
}
  0x46   : > { %s862_s11 = scalar_lea.vmem %s1149_s10, 128  ;;  %p870_p7 = scmp.lt.s32.totalorder %s1149_s10, %s1149_s10 }
  0x47   : > { %p863_p0 = scmp.ne.s32.totalorder %s1149_s10, %s862_s11  ;;  %p871_p4 = scmp.lt.s32.totalorder %s862_s11, %s862_s11 }
  0x49   : > { %p865_p8 = pnand %p863_p0, %p851_p2  ;;  %p872_p12 = por %p871_p4, %p870_p7 }
  0x4b   : > { %p866_p9 = pneg %p865_p8 }
  0x4d   : > { %p873_p6 = pnand %p872_p12, %p866_p9 }
  0x4f   : > { %876 = shalt.err (!%p873_p6)
}
  0x50   : > { %s1000_s1 = smov 64   ;;  %s1001_s18 = smov 4  }
  0x51   : > { %732 = dma.hbm_to_vmem [thread:$0]  (!%p1158_p1), %s1285_s0, 128, %s1149_s10, [#allocation4], %s1000_s1, %s1000_s1, %s1001_s18  }
  0x52   : > { %s877_s6 = scalar_lea.hbm %s1165_s25, 64  ;;  %p1306_p0 = scmp.ne.s32.totalorder %s1300_s29, 0 }
  0x53   : > { %p878_p8 = scmp.ne.s32.totalorder %s1165_s25, %s877_s6  ;;  %s882_s21 = scalar_lea.hbm %s1287_s2, 192 }
  0x54   : > { %p1307_p4 = pneg %p1306_p0  ;;  %p883_p9 = scmp.lt.u32.totalorder %s1165_s25, %s1287_s2 }
  0x55   : > { %p884_p12 = scmp.lt.u32.totalorder %s882_s21, %s877_s6  ;;  %p886_p2 = scmp.lt.u32.totalorder %s877_s6, %s1165_s25 }
  0x56   : > { %p880_p7 = pnand %p878_p8, %p1307_p4 }
  0x57   : > { %p885_p10 = por %p884_p12, %p883_p9 }
  0x58   : > { %p881_p6 = pneg %p880_p7 }
  0x59   : > { %p887_p3 = por %p886_p2, %p885_p10 }
  0x5b   : > { %p888_p5 = pnand %p887_p3, %p881_p6 }
  0x5d   : > { %891 = shalt.err (!%p888_p5)
}
  0x5e   : > { %s892_s10 = scalar_lea.vmem %s1167_s27, 64  ;;  %p1308_p11 = pmov %p1307_p4 }
  0x5f   : > { %p893_p1 = scmp.ne.s32.totalorder %s1167_s27, %s892_s10  ;;  %s1002_s20 = smov [#allocation8]  }
  0x60   : > { %s897_s1 = sshll.u32 %s1002_s20, 4  ;;  %s898_s1 = int_to_ptr.vmem [resolvable:$false] %s897_s1 }
  0x61   : > { %p895_p13 = pnand %p893_p1, %p1308_p11  ;;  %s899_s18 = scalar_lea.vmem %s898_s1, 128 }
  0x62   : > { %p900_p4 = scmp.lt.s32.totalorder %s1167_s27, %s898_s1  ;;  %p901_p7 = scmp.lt.s32.totalorder %s899_s18, %s892_s10 }
  0x63   : > { %p896_p8 = pneg %p895_p13 }
  0x64   : > { %p902_p9 = por %p901_p7, %p900_p4 }
  0x66   : > { %p903_p12 = pnand %p902_p9, %p896_p8 }
  0x68   : > { %906 = shalt.err (!%p903_p12)
}
  0x69   : > { %739 = dma.hbm_to_vmem [thread:$0]  (!%p1306_p0), %s1165_s25, 64, %s1167_s27, %s1090_s5  }
  0x6a   : > { %p1309_p6 = scmp.ne.s32.totalorder %s1304_s8, 0 }
  0x6b   : > { %p1310_p10 = scmp.eq.s32.totalorder (!%p1309_p6), %s1119_s30, 0 }
  0x6c   : > { %229 = sbr.rel (%p1309_p6) target bundleno = 366 (0x16e), region = 32 }
  0x73   : > { %960 = dma.done.wait (%p1310_p10), [#allocation4], 128   ;;  %p1311_p2 = pmov %p1310_p10 }
  0x74   : > { %s235_s19 = sand.u32 1, %s1119_s30   ;;  %s1222_s26 = sand.u32 1, %s977_s13  }
  0x75   : > { %962 = vsyncadd (%p1311_p2), [#allocation4], 4294967168  ;;  %s689_s29 = sshll.u32 %s1222_s26, 6  ;;  %s236_s6 = scalar_lea.sflag [#allocation7], %s235_s19 }
  0x76   : > { %s239_s9 = scalar_lea.vmem [#allocation6], %s689_s29  ;;  %p1312_p0 = scmp.ne.s32.totalorder %s1301_s7, 0 }
  0x78   : > { %964 = dma.done.wait (%p1312_p0), %s236_s6, 1088  }
  0x79   : > { %966 = vsyncadd (%p1312_p0), %s236_s6, 4294966208  ;;  %v1003_v0 = vmov 0   ;;  %v806_v1 = vld [vmem:[%s239_s9 + $0x4] ss:$16 sps:$4 sm:$0xff]   ;;  %v808_v2 = vld [vmem:[%s239_s9 + $0xc] ss:$16 sps:$4 sm:$0xff]   ;;  %v477_v10 = vlaneseq }
  0x7a   : > { %394 = vmatprep.mubr.bf16.mxu0 %v1003_v0  ;;  %437 = vmatprep.mubr.bf16.mxu1 %v1003_v0  ;;  %v810_v3 = vld [vmem:[%s239_s9] ss:$16 sps:$4 sm:$0xff]   ;;  %v811_v4 = vld [vmem:[%s239_s9 + $0x8] ss:$16 sps:$4 sm:$0xff]   ;;  %v812_v5 = vld [vmem:[%s239_s9 + $0x24] ss:$16 sps:$4 sm:$0xff]  }
  0x7b   : > { %362 = vmatprep.subr.bf16.mxu0 %v806_v1  ;;  %405 = vmatprep.subr.bf16.mxu1 %v808_v2  ;;  %v814_v6 = vld [vmem:[%s239_s9 + $0x2c] ss:$16 sps:$4 sm:$0xff]   ;;  %v816_v7 = vld [vmem:[%s239_s9 + $0x20] ss:$16 sps:$4 sm:$0xff]   ;;  %v817_v8 = vld [vmem:[%s239_s9 + $0x28] ss:$16 sps:$4 sm:$0xff]  }
  0x7c   : > { %363 = vmatpush1.bf16.msra.mxu0 %v810_v3  ;;  %406 = vmatpush1.bf16.msra.mxu1 %v811_v4  ;;  %v818_v9 = vld [vmem:[#allocation3] sm:$0xff]   ;;  %vm358_vm0 = vcmask 261120   ;;  %s690_s5 = sshll.u32 %s1222_s26, 2  ;;  %v478_v11 = vshrl.u32 %v477_v10, 7  ;;  %s691_s7 = sshll.u32 %s1222_s26, 5 }
  0x7d   : > { %364 = vmatprep.subr.bf16.mxu0 %v812_v5  ;;  %407 = vmatprep.subr.bf16.mxu1 %v814_v6  ;;  %s248_s30 = scalar_lea.vmem [#allocation8], %s690_s5  ;;  %s275_s8 = scalar_lea.vmem [#allocation9], %s691_s7 }
  0x7e   : > { %v479_v12 = vsub.s32 0, %v478_v11  ;;  %v487_v13 = vsub.s32 2, %v478_v11  ;;  %v475_v14 = vld [vmem:[%s248_s30] sm:$0xf]  ;;  %v483_v15 = vsub.s32 1, %v478_v11  ;;  %v491_v16 = vsub.s32 3, %v478_v11 }
  0x7f   : > { %s550_s25 = sshll.u32 %s275_s8, 4  ;;  %s718_s27 = sshll.u32 %s985_s15, 8  ;;  %s1232_s25 = int_to_ptr.vmem [resolvable:$true] %s550_s25 }
  0x80   : > { %365 = vmatpush1.bf16.msra.mxu0 %v816_v7  ;;  %408 = vmatpush1.bf16.msra.mxu1 %v817_v8  ;;  %v480_v17 = vrot.slane %v475_v14, %v479_v12  ;;  %v488_v18 = vrot.slane %v475_v14, %v487_v13  ;;  %v484_v19 = vrot.slane %v475_v14, %v483_v15  ;;  %s1237_s23 = scalar_lea.hbm %s1288_s3, %s718_s27  ;;  %s534_s15 = scalar_lea.sflag [#allocation5], %s1222_s26 }
  0x81   : > { %v492_v20 = vrot.slane %v475_v14, %v491_v16  ;;  %s907_s11 = scalar_lea.vmem %s1232_s25, 512  ;;  %p1313_p5 = scmp.ne.s32.totalorder %s1302_s28, 0 }
  0x82   : > { %p908_p3 = scmp.ne.s32.totalorder %s1232_s25, %s907_s11  ;;  %s1004_s10 = smov [#allocation9]  }
  0x83   : > { %701 = vmatmul.mubr.msk.bf16.vlgmr.msra.gmra.mrb[0].mxu0 %vm358_vm0, %v818_v9  ;;  %702 = vmatmul.mubr.msk.bf16.vlgmr.msra.gmra.mrb[0].mxu1 %vm358_vm0, %v818_v9  ;;  %s911_s20 = sshll.u32 %s1004_s10, 4  ;;  %s912_s20 = int_to_ptr.vmem [resolvable:$false] %s911_s20 }
  0x84   : > { %p909_p1 = pnand %p908_p3, %p1313_p5  ;;  %s913_s1 = scalar_lea.vmem %s912_s20, 1024 }
  0x85   : > { %p914_p13 = scmp.lt.s32.totalorder %s1232_s25, %s912_s20  ;;  %p915_p8 = scmp.lt.s32.totalorder %s913_s1, %s907_s11 }
  0x86   : > { %p910_p11 = pneg %p909_p1 }
  0x87   : > { %p916_p4 = por %p915_p8, %p914_p13 }
  0x89   : > { %p917_p7 = pnand %p916_p4, %p910_p11 }
 0x156   : > { %v396_v21 = vpop.f32.mrb[0].mxu0  ;;  %v439_v22 = vpop.f32.mrb[0].mxu1 }
 0x157   : > { %v497_v23 = vadd.f32 %v480_v17, %v396_v21  ;;  %v499_v24 = vadd.f32 %v488_v18, %v439_v22  ;;  %v398_v25 = vpop.f32.mrb[1].mxu0  ;;  %v441_v26 = vpop.f32.mrb[1].mxu1 }
 0x158   : > { %v498_v27 = vadd.f32 %v484_v19, %v398_v25  ;;  %v500_v28 = vadd.f32 %v492_v20, %v441_v26  ;;  %v400_v29 = vpop.f32.mrb[2].mxu0  ;;  %v443_v30 = vpop.f32.mrb[2].mxu1 }
 0x159   : > { %v501_v31 = vadd.f32 %v480_v17, %v400_v29  ;;  %v503_v32 = vadd.f32 %v488_v18, %v443_v30  ;;  %v402_v33 = vpop.f32.mrb[3].mxu0  ;;  %v445_v34 = vpop.f32.mrb[3].mxu1 }
 0x15a   : > { %v714_v35 = vpack.c.bf16 %v498_v27, %v497_v23  ;;  %v715_v36 = vpack.c.bf16 %v500_v28, %v499_v24  ;;  %v502_v37 = vadd.f32 %v484_v19, %v402_v33  ;;  %v504_v38 = vadd.f32 %v492_v20, %v445_v34 }
 0x15c   : > { %529 = vst [vmem:[%s275_s8] sm:$0xff] %v714_v35  ;;  %530 = vst [vmem:[%s275_s8 + $0x8] sm:$0xff] %v715_v36  ;;  %v716_v39 = vpack.c.bf16 %v502_v37, %v501_v31  ;;  %v717_v40 = vpack.c.bf16 %v504_v38, %v503_v32 }
 0x15e   : > { %531 = vst [vmem:[%s275_s8 + $0x10] sm:$0xff] %v716_v39  ;;  %532 = vst [vmem:[%s275_s8 + $0x18] sm:$0xff] %v717_v40 }
 0x15f   : > { %920 = shalt.err (!%p917_p7)
}
 0x160   : > { %s921_s18 = scalar_lea.hbm %s1237_s23, 512  ;;  %s925_s6 = scalar_lea.hbm %s1288_s3, 1536 }
 0x161   : > { %p922_p9 = scmp.ne.s32.totalorder %s1237_s23, %s921_s18  ;;  %p926_p10 = scmp.lt.u32.totalorder %s1237_s23, %s1288_s3 }
 0x162   : > { %p927_p2 = scmp.lt.u32.totalorder %s925_s6, %s921_s18  ;;  %p929_p3 = scmp.lt.u32.totalorder %s921_s18, %s1237_s23 }
 0x163   : > { %p923_p12 = pnand %p922_p9, %p1313_p5 }
 0x164   : > { %p928_p0 = por %p927_p2, %p926_p10 }
 0x165   : > { %p924_p6 = pneg %p923_p12 }
 0x166   : > { %p930_p1 = por %p929_p3, %p928_p0 }
 0x168   : > { %p931_p11 = pnand %p930_p1, %p924_p6 }
 0x16a   : > { %934 = shalt.err (!%p931_p11)
}
 0x16b   : > { %s1005_s30 = smov 256   ;;  %s1006_s7 = smov 768  }
 0x16c   : > { %s1007_s8 = smov 16  }
 0x16d   : > { %727 = dma.vmem_to_hbm [thread:$0]  (%p1313_p5), %s1232_s25, 512, %s1237_s23, %s534_s15, %s1005_s30, %s1006_s7, %s1007_s8  }
 0x16e PF: > { %p747_p13 = scmp.ge.s32.totalorder %s993_s17, 2  ;;  %s565_s27 = sand.u32 1, %s973_s12  }
 0x16f   : > { %p1314_p8 = scmp.ne.s32.totalorder %s1303_s4, 0  ;;  %s566_s22 = scalar_lea.sflag [#allocation5], %s565_s27 }
 0x171   : > { %p741_p4 = pnand %p747_p13, %p1314_p8 }
 0x173   : > { %968 = dma.done.wait (!%p741_p4), %s566_s22, 512  }
 0x174   : > { %970 = vsyncadd (!%p741_p4), %s566_s22, 4294966784  ;;  %s20_s17 = sadd.s32 1, %s993_s17   ;;  %s1315_s28 = sld [smem:[#allocation13_spill]] }
 0x175   : > { %p17_p7 = scmp.ge.s32.totalorder %s20_s17, 5   ;;  %s1316_s12 = smov %s977_s13 }
 0x176   : > { %s1317_s13 = smov %s981_s14  ;;  %s1318_s14 = smov %s1075_s24 }
 0x177   : > { %s1319_s15 = smov %s989_s16  ;;  %19 = sbr.rel (!%p17_p7) target bundleno = 9 (0x9), region = 102 }
 0x17a   : > { %s1320_s16 = smov %s1315_s28 }
 0x17e   :  { %571 = vsyncpa [#allocation4], 1 }
 0x17f   :  { %573 = vsyncpa [#allocation4 + $0x1], 1 }
 0x180   :  { %574 = vsyncpa [#allocation7], 1 }
 0x181   :  { %576 = vsyncpa [#allocation7 + $0x1], 1 }
 0x182   :  { %577 = vsyncpa [#allocation5], 1 }
 0x183   :  { %579 = vsyncpa [#allocation5 + $0x1], 1 }

</bundles_post_ra>
